<compile_context>
chip_gen: v6e
topology: v6e:2x2x1
jax: 0.10.0
libtpu: 0.0.40
codegen_flags: <defaults>
</compile_context>

<pallas_src>
import functools

import jax
import jax.numpy as jnp
from jax.experimental import pallas as pl
from jax.experimental.pallas import tpu as pltpu


_VMEM_LIMIT = 48 * 1024 * 1024    # <= v7x physical (64 MiB), well inside v5e/v6e
_TILE_BUDGET = 6 * 1024 * 1024    # per double-buffered block-set budget


# ----------------------------------------------------------------------------
# Tile-size helper: largest candidate that divides `total` and fits the budget.
# Candidates are 256-multiples first (v6e/v7x MXU), then 128/8 multiples.
# ----------------------------------------------------------------------------
def _pick_tile(total, per_unit_bytes, max_bytes=_TILE_BUDGET,
               candidates=(2048, 1024, 512, 256, 128, 64, 32, 16, 8)):
    if total * per_unit_bytes <= max_bytes:
        return total                       # whole dim in one block (always legal)
    for c in candidates:
        if c < total and total % c == 0 and c * per_unit_bytes <= max_bytes:
            return c
    # fallback: largest 8-multiple divisor that still fits the budget
    best, d = None, 8
    while d < total:
        if total % d == 0 and d * per_unit_bytes <= max_bytes:
            best = d
        d += 8
    # last resort: full dim (block == array dim is always legal; only hit for
    # pathological shapes with no sublane-friendly divisor)
    return best if best is not None else total


# ----------------------------------------------------------------------------
# Fused Linear kernel:  y = post_ln( act( pre_ln(x) @ W + b ) + residual )
# Weight block is the full (K, N) matrix (VMEM-resident, constant index_map).
# ----------------------------------------------------------------------------
def _linear_kernel(*refs, pre_ln, activation, has_residual, post_ln, eps):
    it = iter(refs)
    x_ref = next(it)
    w_ref = next(it)
    b_ref = next(it)
    g_ref = bt_ref = res_ref = og_ref = ob_ref = None
    if pre_ln:
        g_ref = next(it)
        bt_ref = next(it)
    if has_residual:
        res_ref = next(it)
    if post_ln:
        og_ref = next(it)
        ob_ref = next(it)
    o_ref = next(it)

    x = x_ref[...].astype(jnp.float32)                 # (tm, K), LN stats in f32
    if pre_ln:
        mu = jnp.mean(x, axis=-1, keepdims=True)
        xc = x - mu
        var = jnp.mean(xc * xc, axis=-1, keepdims=True)
        x = xc * jax.lax.rsqrt(var + eps) * g_ref[...] + bt_ref[...]

    # bf16 operands into the MXU, f32 accumulation.
    y = jnp.dot(x.astype(jnp.bfloat16), w_ref[...],
                preferred_element_type=jnp.float32)
    y = y + b_ref[...]
    if activation == "gelu":
        # PyTorch nn.GELU default = exact (erf) GELU
        y = jax.nn.gelu(y, approximate=False)
    if has_residual:
        y = y + res_ref[...].astype(jnp.float32)
    if post_ln:
        mu = jnp.mean(y, axis=-1, keepdims=True)
        yc = y - mu
        var = jnp.mean(yc * yc, axis=-1, keepdims=True)
        y = yc * jax.lax.rsqrt(var + eps) * og_ref[...] + ob_ref[...]
    o_ref[...] = y.astype(o_ref.dtype)


def linear_pallas(x, w, b, *, activation=None, pre_ln=None, residual=None,
                  post_ln=None, eps=1e-5, out_dtype=jnp.bfloat16):
    """Tiled fused linear.  x:(M,K) bf16/f32, w:(K,N) bf16, b:(N,)."""
    M, K = x.shape
    N = w.shape[1]
    x = x.astype(jnp.bfloat16)
    w = w.astype(jnp.bfloat16)                 # no-op: weights pre-cast at init
    b2 = b.reshape(1, N).astype(jnp.float32)

    # Per-row bytes of the M-tiled double-buffered blocks (weight is resident).
    out_sz = jnp.dtype(out_dtype).itemsize
    per_row = 2 * (2 * K + out_sz * N + (2 * N if residual is not None else 0))
    tm = _pick_tile(M, per_row)
    grid = (M // tm,)

    in_specs = [
        pl.BlockSpec((tm, K), lambda i: (i, 0)),
        pl.BlockSpec((K, N), lambda i: (0, 0)),        # VMEM-resident weight
        pl.BlockSpec((1, N), lambda i: (0, 0)),
    ]
    args = [x, w, b2]
    if pre_ln is not None:
        g, bt = pre_ln
        in_specs += [pl.BlockSpec((1, K), lambda i: (0, 0)),
                     pl.BlockSpec((1, K), lambda i: (0, 0))]
        args += [g.reshape(1, K).astype(jnp.float32),
                 bt.reshape(1, K).astype(jnp.float32)]
    if residual is not None:
        in_specs += [pl.BlockSpec((tm, N), lambda i: (i, 0))]
        args += [residual.astype(jnp.bfloat16)]
    if post_ln is not None:
        og, ob = post_ln
        in_specs += [pl.BlockSpec((1, N), lambda i: (0, 0)),
                     pl.BlockSpec((1, N), lambda i: (0, 0))]
        args += [og.reshape(1, N).astype(jnp.float32),
                 ob.reshape(1, N).astype(jnp.float32)]

    kernel = functools.partial(
        _linear_kernel, pre_ln=pre_ln is not None, activation=activation,
        has_residual=residual is not None, post_ln=post_ln is not None, eps=eps)
    return pl.pallas_call(
        kernel,
        out_shape=jax.ShapeDtypeStruct((M, N), out_dtype),
        grid=grid,
        in_specs=in_specs,
        out_specs=pl.BlockSpec((tm, N), lambda i: (i, 0)),
        compiler_params=pltpu.CompilerParams(
            dimension_semantics=("parallel",),
            vmem_limit_bytes=_VMEM_LIMIT),
    )(*args)


# ----------------------------------------------------------------------------
# Neighborhood attention kernel: VPU-unrolled over the ks*ks neighbors,
# per-head results stored directly into the lane-dense output block.
# q:(B,HW,C) bf16   k_nbr/v_nbr:(B,HW,K2*C) bf16   bias:(HW,nH*K2) f32
# ----------------------------------------------------------------------------
def _nat_attn_kernel(q_ref, k_ref, v_ref, b_ref, o_ref, *, scale, num_heads,
                     head_dim, k2, channels):
    q = q_ref[0].astype(jnp.float32)                    # (tn, C)
    kn = k_ref[0]                                       # (tn, K2*C) bf16
    vn = v_ref[0]
    bias = b_ref[...]                                   # (tn, nH*K2) f32
    tn = q.shape[0]
    for h in range(num_heads):                          # static unroll, nH small
        c0 = h * head_dim
        qh = q[:, c0:c0 + head_dim]
        # logits: per-neighbor VPU multiply + short lane reduce (no MXU padding)
        cols = []
        for j in range(k2):
            kj = kn[:, j * channels + c0: j * channels + c0 + head_dim]
            cols.append(jnp.sum(qh * kj.astype(jnp.float32),
                                axis=-1, keepdims=True))
        s = jnp.concatenate(cols, axis=-1) * scale      # (tn, K2) f32
        s = s + bias[:, h * k2:(h + 1) * k2]
        m = jnp.max(s, axis=-1, keepdims=True)
        p = jnp.exp(s - m)
        p = p * pl.reciprocal(jnp.sum(p, axis=-1, keepdims=True), approx=True)
        # PV: VPU multiply-accumulate over K2 neighbors, f32 accumulator
        acc = jnp.zeros((tn, head_dim), jnp.float32)
        for j in range(k2):
            vj = vn[:, j * channels + c0: j * channels + c0 + head_dim]
            acc = acc + p[:, j:j + 1] * vj.astype(jnp.float32)
        o_ref[0, :, c0:c0 + head_dim] = acc.astype(o_ref.dtype)


def nat_attention_pallas(q, k_nbr, v_nbr, bias, scale, num_heads):
    B, HW, C = q.shape
    K2C = k_nbr.shape[-1]
    K2 = bias.shape[-1] // num_heads
    hd = C // num_heads
    # per-token resident bytes (double-buffered q/k/v/out blocks, bias row
    # lane-padded to >=128 lanes)
    per_tok = 2 * (2 * 2 * C + 2 * 2 * K2C + 4 * max(num_heads * K2, 128))
    tn = _pick_tile(HW, per_tok)
    grid = (B, HW // tn)
    kernel = functools.partial(_nat_attn_kernel, scale=scale,
                               num_heads=num_heads, head_dim=hd, k2=K2,
                               channels=C)
    return pl.pallas_call(
        kernel,
        out_shape=jax.ShapeDtypeStruct((B, HW, C), jnp.bfloat16),
        grid=grid,
        in_specs=[
            pl.BlockSpec((1, tn, C), lambda b, t: (b, t, 0)),
            pl.BlockSpec((1, tn, K2C), lambda b, t: (b, t, 0)),
            pl.BlockSpec((1, tn, K2C), lambda b, t: (b, t, 0)),
            # bias table is batch-independent: same block reused for every b
            pl.BlockSpec((tn, num_heads * K2), lambda b, t: (t, 0)),
        ],
        out_specs=pl.BlockSpec((1, tn, C), lambda b, t: (b, t, 0)),
        compiler_params=pltpu.CompilerParams(
            dimension_semantics=("parallel", "parallel"),
            vmem_limit_bytes=_VMEM_LIMIT),
    )(q, k_nbr, v_nbr, bias)


# ----------------------------------------------------------------------------
# JAX glue: neighborhood gather (NATTEN semantics, dilation=1), rpb table
# ----------------------------------------------------------------------------
def _neighbor_indices(L, ks):
    nh = ks // 2
    start = jnp.clip(jnp.arange(L) - nh, 0, L - ks)          # clamped window start
    return start[:, None] + jnp.arange(ks)[None, :]          # (L, ks)


def _gather_neighbors_lane_major(img, ks):
    # img: (B, H, W, C) bf16 -> (B, H*W, ks*ks*C) bf16 (lane-major neighbors)
    B, H, W, C = img.shape
    idx_i = _neighbor_indices(H, ks)
    idx_j = _neighbor_indices(W, ks)
    g = img[:, idx_i]                                        # (B, H, ks, W, C)
    g = g[:, :, :, idx_j]                                    # (B, H, ks, W, ks, C)
    g = jnp.transpose(g, (0, 1, 3, 2, 4, 5))                 # (B, H, W, ks, ks, C)
    return g.reshape(B, H * W, ks * ks * C), idx_i, idx_j


def _rpb_table(rpb, idx_i, idx_j, ks, H, W):
    # rpb: (nH, 2ks-1, 2ks-1) -> flat (H*W, nH*ks*ks) f32 table, batch-independent
    rel_i = idx_i - jnp.arange(H)[:, None] + ks - 1          # (H, ks)
    rel_j = idx_j - jnp.arange(W)[:, None] + ks - 1          # (W, ks)
    b = rpb[:, rel_i]                                        # (nH, H, ks, 2ks-1)
    b = b[:, :, :, rel_j]                                    # (nH, H, ks, W, ks)
    b = jnp.transpose(b, (1, 3, 0, 2, 4))                    # (H, W, nH, ks, ks)
    return b.reshape(H * W, rpb.shape[0] * ks * ks).astype(jnp.float32)


def _neighborhood_attention_core(q_flat, k_flat, v_flat, rpb, B, H, W,
                                 num_heads, ks):
    C = q_flat.shape[-1]
    hd = C // num_heads
    scale = hd ** -0.5
    HW = H * W
    q = q_flat.astype(jnp.bfloat16).reshape(B, HW, C)
    # TODO(synk): the ks^2-expanded K/V neighbor gather is still an HBM
    #             intermediate (bf16, lane-major (B, HW, K2*C)); an in-kernel
    #             haloed row-tile DMA would cut K/V HBM reads back to 1x.
    k_img = k_flat.astype(jnp.bfloat16).reshape(B, H, W, C)
    v_img = v_flat.astype(jnp.bfloat16).reshape(B, H, W, C)
    k_nbr, idx_i, idx_j = _gather_neighbors_lane_major(k_img, ks)
    v_nbr, _, _ = _gather_neighbors_lane_major(v_img, ks)
    bias = _rpb_table(rpb, idx_i, idx_j, ks, H, W)
    out = nat_attention_pallas(q, k_nbr, v_nbr, bias, scale, num_heads)
    return out.reshape(B * HW, C)


# ----------------------------------------------------------------------------
# Module forward passes (all LN / GELU / residual adds fused into the matmuls)
# ----------------------------------------------------------------------------
def nat_layer_forward(p, x_flat, B, H, W, num_heads, ks):
    C = x_flat.shape[-1]
    qkv = linear_pallas(x_flat, p["qkv_w"], p["qkv_b"],
                        pre_ln=(p["norm1_w"], p["norm1_b"]))        # norm1 fused
    q, k, v = qkv[:, :C], qkv[:, C:2 * C], qkv[:, 2 * C:]
    a = _neighborhood_attention_core(q, k, v, p["rpb"], B, H, W, num_heads, ks)
    x_flat = linear_pallas(a, p["proj_w"], p["proj_b"], residual=x_flat)
    h = linear_pallas(x_flat, p["fc1_w"], p["fc1_b"], activation="gelu",
                      pre_ln=(p["norm2_w"], p["norm2_b"]))          # norm2 fused
    return linear_pallas(h, p["fc2_w"], p["fc2_b"], residual=x_flat)


def nat_cross_layer_forward(p, x_flat, q_extra_flat, B, H, W, num_heads, ks):
    # TODO(synk): NeighborhoodCrossAttention source not in the reference; kept the
    #             NATTEN-style implementation: q from q_extra, k/v from norm1(x).
    C = x_flat.shape[-1]
    q = linear_pallas(q_extra_flat, p["q_w"], p["q_b"])
    kv = linear_pallas(x_flat, p["kv_w"], p["kv_b"],
                       pre_ln=(p["norm1_w"], p["norm1_b"]))
    k, v = kv[:, :C], kv[:, C:]
    a = _neighborhood_attention_core(q, k, v, p["rpb"], B, H, W, num_heads, ks)
    x_flat = linear_pallas(a, p["proj_w"], p["proj_b"], residual=x_flat)
    h = linear_pallas(x_flat, p["fc1_w"], p["fc1_b"], activation="gelu",
                      pre_ln=(p["norm2_w"], p["norm2_b"]))
    return linear_pallas(h, p["fc2_w"], p["fc2_b"], residual=x_flat)


def conv_downsampler_forward(p, x_nhwc):
    """ConvDownsampler: 3x3/s2/p1 conv (no bias) via bf16 im2col + fused
    Pallas matmul with the output LayerNorm in the matmul epilogue."""
    B, H, W, Cin = x_nhwc.shape
    Ho, Wo = (H + 1) // 2, (W + 1) // 2
    x_bf = x_nhwc.astype(jnp.bfloat16)
    xpad = jnp.pad(x_bf, ((0, 0), (1, 1), (1, 1), (0, 0)))
    ii = 2 * jnp.arange(Ho)[:, None] + jnp.arange(3)[None, :]
    jj = 2 * jnp.arange(Wo)[:, None] + jnp.arange(3)[None, :]
    patches = xpad[:, ii]                                    # (B, Ho, 3, W+2, Cin)
    patches = patches[:, :, :, jj]                           # (B, Ho, 3, Wo, 3, Cin)
    patches = jnp.transpose(patches, (0, 1, 3, 2, 4, 5)).reshape(B * Ho * Wo, 9 * Cin)
    w2d = p["conv_w2d"]                                      # (9*Cin, Cout) bf16
    Cout = w2d.shape[1]
    y = linear_pallas(patches, w2d, jnp.zeros((Cout,), jnp.float32),
                      post_ln=(p["norm_w"], p["norm_b"]), out_dtype=jnp.float32)
    return y.reshape(B, Ho, Wo, Cout)


def nat_block_forward(params, x, x_multi, num_heads, kernel_size):
    """NATBlock.forward. x: (B, dim, H, W) NCHW, x_multi: (B, dim//2, H, W) NCHW."""
    B, C, H, W = x.shape
    # adapter_img: 1x1 conv == per-pixel linear (Pallas matmul)
    xm = jnp.transpose(x_multi, (0, 2, 3, 1)).reshape(B * H * W, C // 2)
    xm = linear_pallas(xm, params["adapter_w"], params["adapter_b"])
    x_flat = jnp.transpose(x, (0, 2, 3, 1)).reshape(B * H * W, C).astype(jnp.bfloat16)
    for blk in params["blocks"]:
        x_flat = nat_layer_forward(blk, x_flat, B, H, W, num_heads, kernel_size)
    for cblk in params["cross_blocks"]:
        x_flat = nat_cross_layer_forward(cblk, x_flat, xm, B, H, W,
                                         num_heads, kernel_size)
    x_out = x_flat.astype(jnp.float32).reshape(B, H, W, C)
    if params.get("downsample") is None:
        return jnp.transpose(x_out, (0, 3, 1, 2))            # NCHW, as PyTorch
    # TODO(synk): as in the reference, ConvDownsampler(dim*2) expects 2*dim input
    #             channels while x has dim channels -> same shape error as PyTorch.
    return conv_downsampler_forward(params["downsample"], x_out)


# ----------------------------------------------------------------------------
# Deterministic parameter init (synthetic — no checkpoint load).
# Matmul weights are pre-cast to bf16 once here (no per-forward cast traffic).
# ----------------------------------------------------------------------------
def _init(key, shape, scale=0.02, dtype=jnp.float32):
    return (scale * jax.random.normal(key, shape, dtype=jnp.float32)).astype(dtype)


def init_nat_layer(key, dim, num_heads, ks, mlp_ratio=4.0, cross=False):
    keys = jax.random.split(key, 10)
    hidden = int(dim * mlp_ratio)
    p = dict(
        norm1_w=jnp.ones((dim,), jnp.float32), norm1_b=jnp.zeros((dim,), jnp.float32),
        norm2_w=jnp.ones((dim,), jnp.float32), norm2_b=jnp.zeros((dim,), jnp.float32),
        rpb=_init(keys[0], (num_heads, 2 * ks - 1, 2 * ks - 1)),
        proj_w=_init(keys[1], (dim, dim), dtype=jnp.bfloat16),
        proj_b=_init(keys[2], (dim,)),
        fc1_w=_init(keys[3], (dim, hidden), dtype=jnp.bfloat16),
        fc1_b=_init(keys[4], (hidden,)),
        fc2_w=_init(keys[5], (hidden, dim), dtype=jnp.bfloat16),
        fc2_b=_init(keys[6], (dim,)),
    )
    if cross:
        p.update(q_w=_init(keys[7], (dim, dim), dtype=jnp.bfloat16),
                 q_b=_init(keys[8], (dim,)),
                 kv_w=_init(keys[9], (dim, 2 * dim), dtype=jnp.bfloat16),
                 kv_b=jnp.zeros((2 * dim,), jnp.float32))
    else:
        p.update(qkv_w=_init(keys[7], (dim, 3 * dim), dtype=jnp.bfloat16),
                 qkv_b=_init(keys[8], (3 * dim,)))
    return p


def init_nat_block(key, dim, depth, depth_cross, num_heads, ks, downsample):
    keys = jax.random.split(key, depth + depth_cross + 3)
    params = dict(
        adapter_w=_init(keys[0], (dim // 2, dim), dtype=jnp.bfloat16),
        adapter_b=_init(keys[1], (dim,)),
        blocks=[init_nat_layer(keys[2 + i], dim, num_heads, ks) for i in range(depth)],
        cross_blocks=[init_nat_layer(keys[2 + depth + i], dim, num_heads, ks, cross=True)
                      for i in range(depth_cross)],
        downsample=None,
    )
    if downsample:
        din = dim * 2   # faithful to the reference (ConvDownsampler(dim * 2))
        conv_w = _init(keys[-1], (2 * din, din, 3, 3))
        params["downsample"] = dict(
            conv_w2d=jnp.transpose(conv_w, (2, 3, 1, 0)).reshape(9 * din, 2 * din)
                        .astype(jnp.bfloat16),
            norm_w=jnp.ones((2 * din,), jnp.float32),
            norm_b=jnp.zeros((2 * din,), jnp.float32),
        )
    return params


# ----------------------------------------------------------------------------
if __name__ == "__main__":
    key = jax.random.PRNGKey(0)
    B, dim, H, W = 2, 32, 8, 8
    num_heads, kernel_size = 2, 3
    k1, k2, k3 = jax.random.split(key, 3)
    x = jax.random.normal(k1, (B, dim, H, W), jnp.float32)
    x_multi = jax.random.normal(k2, (B, dim // 2, H, W), jnp.float32)

    # downsample=False for the block (the reference's downsample=True path has a
    # channel mismatch); the ConvDownsampler kernel is exercised standalone below.
    params = init_nat_block(k3, dim, depth=1, depth_cross=1,
                            num_heads=num_heads, ks=kernel_size, downsample=False)

    out = nat_block_forward(params, x, x_multi, num_heads, kernel_size)
    out = jax.block_until_ready(out)
    assert out.shape == (B, dim, H, W)
    assert out.dtype == jnp.float32

    conv_w = _init(jax.random.PRNGKey(1), (2 * dim, dim, 3, 3))
    ds_params = dict(
        conv_w2d=jnp.transpose(conv_w, (2, 3, 1, 0)).reshape(9 * dim, 2 * dim)
                    .astype(jnp.bfloat16),
        norm_w=jnp.ones((2 * dim,), jnp.float32),
        norm_b=jnp.zeros((2 * dim,), jnp.float32),
    )
    out_ds = conv_downsampler_forward(ds_params, jnp.transpose(out, (0, 2, 3, 1)))
    out_ds = jax.block_until_ready(out_ds)
    assert out_ds.shape == (B, H // 2, W // 2, 2 * dim)

    print("KERNEL_OK")
</pallas_src>

<mosaic_0001>
module attributes {stable_mosaic.version = 11 : i64} {
  func.func @_linear_kernel(%arg0: i32, %arg1: memref<128x16xbf16, #tpu.memory_space<vmem>>, %arg2: memref<16x32xbf16, #tpu.memory_space<vmem>>, %arg3: memref<1x32xf32, #tpu.memory_space<vmem>>, %arg4: memref<128x32xbf16, #tpu.memory_space<vmem>>) attributes {dimension_semantics = [#tpu.dimension_semantics<parallel>], iteration_bounds = array<i64: 1>, scalar_prefetch = 0 : i64, scratch_operands = 0 : i64, tpu.core_type = #tpu.core_type<tc>, window_params = [{transform_indices = @transform_0, window_bounds = array<i64: 128, 16>}, {pipeline_mode = #tpu.pipeline_mode<synchronous>, transform_indices = @transform_1, window_bounds = array<i64: 16, 32>}, {pipeline_mode = #tpu.pipeline_mode<synchronous>, transform_indices = @transform_2, window_bounds = array<i64: 1, 32>}, {transform_indices = @transform_3, window_bounds = array<i64: 128, 32>}]} {
    %c0 = arith.constant 0 : index
    %c0_0 = arith.constant 0 : index
    %0 = vector.load %arg1[%c0, %c0_0] : memref<128x16xbf16, #tpu.memory_space<vmem>>, vector<128x16xbf16>
    %1 = arith.extf %0 : vector<128x16xbf16> to vector<128x16xf32>
    %2 = arith.truncf %1 : vector<128x16xf32> to vector<128x16xbf16>
    %c0_1 = arith.constant 0 : index
    %c0_2 = arith.constant 0 : index
    %3 = vector.load %arg2[%c0_1, %c0_2] : memref<16x32xbf16, #tpu.memory_space<vmem>>, vector<16x32xbf16>
    %cst = arith.constant dense<0.000000e+00> : vector<128x32xf32>
    %4 = tpu.matmul %2, %3, %cst {dimension_numbers = #tpu.dot_dimension_numbers<[1], [0], [0], [1], [0, 0, 1, 1], [], []>} : vector<128x16xbf16>, vector<16x32xbf16>, vector<128x32xf32> -> vector<128x32xf32>
    %c0_3 = arith.constant 0 : index
    %c0_4 = arith.constant 0 : index
    %5 = vector.load %arg3[%c0_3, %c0_4] : memref<1x32xf32, #tpu.memory_space<vmem>>, vector<1x32xf32>
    %6 = vector.broadcast %5 : vector<1x32xf32> to vector<128x32xf32>
    %7 = arith.addf %4, %6 : vector<128x32xf32>
    %8 = arith.truncf %7 : vector<128x32xf32> to vector<128x32xbf16>
    %c0_5 = arith.constant 0 : index
    %c0_6 = arith.constant 0 : index
    %9 = vector.load %arg4[%c0_5, %c0_6] : memref<128x32xbf16, #tpu.memory_space<vmem>>, vector<128x32xbf16>
    tpu.vector_store %arg4[%c0_5, %c0_6], %8 {strides = array<i32>} : memref<128x32xbf16, #tpu.memory_space<vmem>>, vector<128x32xbf16>,
    return
  }
  func.func @transform_0(%arg0: i32) -> (i32, i32) {
    %c0_i32 = arith.constant 0 : i32
    %c0_i32_0 = arith.constant 0 : i32
    return %arg0, %c0_i32 : i32, i32
  }
  func.func @transform_1(%arg0: i32) -> (i32, i32) {
    %c0_i32 = arith.constant 0 : i32
    %c0_i32_0 = arith.constant 0 : i32
    %c0_i32_1 = arith.constant 0 : i32
    return %c0_i32, %c0_i32_0 : i32, i32
  }
  func.func @transform_2(%arg0: i32) -> (i32, i32) {
    %c0_i32 = arith.constant 0 : i32
    %c0_i32_0 = arith.constant 0 : i32
    %c0_i32_1 = arith.constant 0 : i32
    return %c0_i32, %c0_i32_0 : i32, i32
  }
  func.func @transform_3(%arg0: i32) -> (i32, i32) {
    %c0_i32 = arith.constant 0 : i32
    %c0_i32_0 = arith.constant 0 : i32
    return %arg0, %c0_i32 : i32, i32
  }
}

</mosaic_0001>

<bundles_post_ra>
// kernel: tpu_custom_call.1
= control target key start
LH: loop header
LB: loop body
LE: loop exit
PB: predicated region body
PF: predicated region fallthrough
CT: control target
= control target key end

     0   :  { %vm86_vm0 = vcmask 130048   ;;  %vm272_vm1 = vcmask 257024   ;;  %s503_s1 = inlined_call_operand.vmem [shape: bf16[16,32], index: 1, kind: input, shape index: {}]   ;;  %s504_s0 = inlined_call_operand.vmem [shape: bf16[128,16], index: 0, kind: input, shape index: {}]   ;;  %s505_s2 = inlined_call_operand.vmem [shape: f32[1,32], index: 2, kind: input, shape index: {}]   ;;  %s506_s3 = inlined_call_operand.vmem [shape: bf16[128,32], index: 3, kind: output, shape index: {}]  }
   0x1   :  { %v372_v0 = vld [vmem:[%s503_s1] sm:$0xff]   ;;  %v375_v3 = vld [vmem:[%s504_s0 + $0x8] sm:$0xff]   ;;  %v377_v5 = vld [vmem:[%s504_s0 + $0x10] sm:$0xff]  }
   0x2   :  { %v373_v1 = vld [vmem:[%s504_s0] sm:$0xff]   ;;  %352 = vmatprep.subr.bf16.mxu0 %v372_v0  ;;  %370 = vmatprep.subr.bf16.mxu1 %v372_v0  ;;  %v376_v4 = vld [vmem:[%s504_s0 + $0x28] sm:$0xff]   ;;  %v378_v6 = vld [vmem:[%s504_s0 + $0x30] sm:$0xff]  }
   0x3   :  { %v374_v2 = vld [vmem:[%s504_s0 + $0x20] sm:$0xff]   ;;  %353 = vmatpush3.bf16.msra.mxu0 %v372_v0  ;;  %371 = vmatpush3.bf16.msra.mxu1 %v372_v0  ;;  %v379_v7 = vld [vmem:[%s504_s0 + $0x18] sm:$0xff]  }
   0x4   :  { %354 = vmatprep.mubr.msk.bf16.mxu0 %vm86_vm0, %v373_v1  ;;  %362 = vmatprep.mubr.msk.bf16.mxu1 %vm86_vm0, %v374_v2  ;;  %v380_v8 = vld [vmem:[%s504_s0 + $0x38] sm:$0xff]   ;;  %v293_v9 = vld [vmem:[%s505_s2] ss:$0 sm:$0xff] }
   0x6   :  { %355 = vmatmul.mubr.msk.bf16.vlgmr.msra.gmra.mxu0 %vm86_vm0, %v375_v3  ;;  %363 = vmatmul.mubr.msk.bf16.vlgmr.msra.gmra.mxu1 %vm86_vm0, %v376_v4 }
   0x7   :  { %358 = vmatprep.mubr.msk.bf16.mxu0 %vm86_vm0, %v377_v5  ;;  %366 = vmatprep.mubr.msk.bf16.mxu1 %vm86_vm0, %v378_v6 }
   0xe   :  { %359 = vmatmul.mubr.msk.bf16.gmra.mxu0 %vm86_vm0, %v379_v7  ;;  %367 = vmatmul.mubr.msk.bf16.gmra.mxu1 %vm86_vm0, %v380_v8 }
  0xc6   :  { %v356_v10 = vpop.f32.mrf.mxu0  ;;  %v364_v11 = vpop.f32.mrf.mxu1 }
  0xc7   :  { %v154_v12 = vadd.f32 %v356_v10, %v293_v9  ;;  %v186_v13 = vadd.f32 %v364_v11, %v293_v9 }
  0xc8   :  { %v145_v14 = vpop.f32.mrf.mxu0  ;;  %v177_v15 = vpop.f32.mrf.mxu1 }
  0xc9   :  { %v329_v16 = vpack.c.bf16 %v154_v12, %v154_v12  ;;  %v337_v17 = vpack.c.bf16 %v186_v13, %v186_v13  ;;  %v146_v18 = vadd.f32 %v293_v9, %v145_v14  ;;  %v178_v19 = vadd.f32 %v293_v9, %v177_v15 }
  0xca   :  { %v357_v20 = vpop.f32.mrf.mxu0  ;;  %v365_v21 = vpop.f32.mrf.mxu1 }
  0xcb   :  { %275 = vst.msk [vmem:[%s506_s3 + $0x8] sm:$0xf] %vm272_vm1, %v329_v16  ;;  %283 = vst.msk [vmem:[%s506_s3 + $0x28] sm:$0xf] %vm272_vm1, %v337_v17  ;;  %v327_v22 = vpack.c.bf16 %v146_v18, %v146_v18  ;;  %v335_v23 = vpack.c.bf16 %v178_v19, %v178_v19  ;;  %v157_v24 = vadd.f32 %v357_v20, %v293_v9 }
  0xcc   :  { %v189_v25 = vadd.f32 %v365_v21, %v293_v9  ;;  %v148_v26 = vpop.f32.mrf.mxu0  ;;  %v180_v27 = vpop.f32.mrf.mxu1 }
  0xcd   :  { %273 = vst.msk [vmem:[%s506_s3] sm:$0xf] %vm272_vm1, %v327_v22  ;;  %281 = vst.msk [vmem:[%s506_s3 + $0x20] sm:$0xf] %vm272_vm1, %v335_v23  ;;  %v330_v28 = vpack.c.bf16 %v157_v24, %v157_v24  ;;  %v149_v30 = vadd.f32 %v293_v9, %v148_v26  ;;  %v181_v31 = vadd.f32 %v293_v9, %v180_v27 }
  0xce   :  { %v338_v29 = vpack.c.bf16 %v189_v25, %v189_v25  ;;  %v360_v32 = vpop.f32.mrf.mxu0  ;;  %v368_v33 = vpop.f32.mrf.mxu1 }
  0xcf   :  { %276 = vst.msk [vmem:[%s506_s3 + $0xc] sm:$0xf] %vm272_vm1, %v330_v28  ;;  %v328_v34 = vpack.c.bf16 %v149_v30, %v149_v30  ;;  %v336_v35 = vpack.c.bf16 %v181_v31, %v181_v31  ;;  %v170_v36 = vadd.f32 %v360_v32, %v293_v9  ;;  %v202_v37 = vadd.f32 %v368_v33, %v293_v9 }
  0xd0   :  { %284 = vst.msk [vmem:[%s506_s3 + $0x2c] sm:$0xf] %vm272_vm1, %v338_v29  ;;  %v161_v38 = vpop.f32.mrf.mxu0  ;;  %v193_v39 = vpop.f32.mrf.mxu1 }
  0xd1   :  { %274 = vst.msk [vmem:[%s506_s3 + $0x4] sm:$0xf] %vm272_vm1, %v328_v34  ;;  %282 = vst.msk [vmem:[%s506_s3 + $0x24] sm:$0xf] %vm272_vm1, %v336_v35  ;;  %v333_v40 = vpack.c.bf16 %v170_v36, %v170_v36  ;;  %v341_v41 = vpack.c.bf16 %v202_v37, %v202_v37  ;;  %v162_v42 = vadd.f32 %v293_v9, %v161_v38 }
  0xd2   :  { %v194_v43 = vadd.f32 %v293_v9, %v193_v39  ;;  %v361_v44 = vpop.f32.mrf.mxu0  ;;  %v369_v45 = vpop.f32.mrf.mxu1 }
  0xd3   :  { %279 = vst.msk [vmem:[%s506_s3 + $0x18] sm:$0xf] %vm272_vm1, %v333_v40  ;;  %287 = vst.msk [vmem:[%s506_s3 + $0x38] sm:$0xf] %vm272_vm1, %v341_v41  ;;  %v331_v46 = vpack.c.bf16 %v162_v42, %v162_v42  ;;  %v173_v48 = vadd.f32 %v361_v44, %v293_v9  ;;  %v205_v49 = vadd.f32 %v369_v45, %v293_v9 }
  0xd4   :  { %v339_v47 = vpack.c.bf16 %v194_v43, %v194_v43  ;;  %v164_v50 = vpop.f32.mrf.mxu0  ;;  %v196_v51 = vpop.f32.mrf.mxu1 }
  0xd5   :  { %277 = vst.msk [vmem:[%s506_s3 + $0x10] sm:$0xf] %vm272_vm1, %v331_v46  ;;  %v334_v52 = vpack.c.bf16 %v173_v48, %v173_v48  ;;  %v342_v53 = vpack.c.bf16 %v205_v49, %v205_v49  ;;  %v165_v54 = vadd.f32 %v293_v9, %v164_v50  ;;  %v197_v55 = vadd.f32 %v293_v9, %v196_v51 }
  0xd6   :  { %285 = vst.msk [vmem:[%s506_s3 + $0x30] sm:$0xf] %vm272_vm1, %v339_v47 }
  0xd7   :  { %280 = vst.msk [vmem:[%s506_s3 + $0x1c] sm:$0xf] %vm272_vm1, %v334_v52  ;;  %288 = vst.msk [vmem:[%s506_s3 + $0x3c] sm:$0xf] %vm272_vm1, %v342_v53  ;;  %v332_v56 = vpack.c.bf16 %v165_v54, %v165_v54  ;;  %v340_v57 = vpack.c.bf16 %v197_v55, %v197_v55 }
  0xd9   :  { %278 = vst.msk [vmem:[%s506_s3 + $0x14] sm:$0xf] %vm272_vm1, %v332_v56  ;;  %286 = vst.msk [vmem:[%s506_s3 + $0x34] sm:$0xf] %vm272_vm1, %v340_v57 }

</bundles_post_ra>
